<compile_context>
chip_gen: v7x
topology: tpu7x:2x2x1
jax: 0.10.0
libtpu: 0.0.40
codegen_flags: <defaults>
</compile_context>

<pallas_src>
import math

import jax
import jax.numpy as jnp
from jax.experimental import pallas as pl
from jax.experimental.pallas import tpu as pltpu


def _round_up(x, m):
    return ((x + m - 1) // m) * m


def _pad_to(a, shape):
    pads = [(0, t - s) for s, t in zip(a.shape, shape)]
    if all(p == (0, 0) for p in pads):
        return a
    return jnp.pad(a, pads)


def twolayer_kernel(x_ref, w1_ref, b1_ref, w2_ref, w3_ref, b2_ref, o_ref):
    # One batch tile per grid step; weights/biases stay VMEM-resident.
    x = x_ref[...]                                   # (TM, d), original dtype
    xc = x.astype(w1_ref.dtype)                      # per-tile cast, hides under MXU
    # fc1 + bias + ReLU (f32 accumulation / elementwise).
    h = jnp.dot(xc, w1_ref[...], preferred_element_type=jnp.float32)
    h = jnp.maximum(h + b1_ref[...], 0.0)
    # fc2 and residual: two dots accumulated in f32 (no concat / VMEM temp).
    y = jnp.dot(h.astype(w2_ref.dtype), w2_ref[...],
                preferred_element_type=jnp.float32)
    y = y + jnp.dot(xc, w3_ref[...], preferred_element_type=jnp.float32)
    o_ref[...] = (y + b2_ref[...]).astype(o_ref.dtype)


def prepare_params(w1, b1, w2, b2, w3, *, compute_dtype=None):
    """One-time weight prep: pad output dims to lane-dense multiples of 128 and
    cast to the MXU compute dtype. Run once, outside the per-call forward.

    compute_dtype: dtype fed to the MXU (jnp.bfloat16 recommended on
                   v5e/v6e/v7x). Accumulation / bias / ReLU stay in f32.
    """
    d, k = w1.shape
    cdt = compute_dtype or w1.dtype
    d_p = _round_up(d, 128)
    k_p = _round_up(k, 128)
    # Contraction dim of fc1 / residual stays d (no need to pad x's features);
    # only output columns are padded (zero cols/rows -> exact math on [:d]).
    w1_p = _pad_to(w1, (d, k_p)).astype(cdt)
    b1_p = _pad_to(b1, (1, k_p)).astype(jnp.float32)
    w2_p = _pad_to(w2, (k_p, d_p)).astype(cdt)
    w3_p = _pad_to(w3, (d, d_p)).astype(cdt)
    b2_p = _pad_to(b2, (1, d_p)).astype(jnp.float32)
    return dict(w1=w1_p, b1=b1_p, w2=w2_p, w3=w3_p, b2=b2_p,
                d=d, k=k, d_p=d_p, k_p=k_p)


def two_layer_forward(x, params):
    """y = relu(x @ w1 + b1) @ w2 + b2 + x @ w3, fused on TPU."""
    B, d = x.shape
    assert d == params["d"], "feature dim mismatch with prepared params"
    d_p, k_p = params["d_p"], params["k_p"]
    w1_p, b1_p = params["w1"], params["b1"]
    w2_p, w3_p, b2_p = params["w2"], params["w3"], params["b2"]
    out_dtype = x.dtype
    cdt = w1_p.dtype

    # Batch tile: big tiles amortize the ~0.35us/step overhead; multiple of 8.
    TM = min(512, _round_up(B, 8))
    n_tiles = pl.cdiv(B, TM)
    if n_tiles > 1 and n_tiles % 2 == 1:
        # v7x megacore: prefer an even tile count so both TensorCores stay busy.
        TM = _round_up(pl.cdiv(B, n_tiles + 1), 8)
        n_tiles = pl.cdiv(B, TM)
    grid = (n_tiles,)

    # Explicit VMEM budget: single-buffered resident weights + double-buffered
    # x/out tiles + f32 intermediates, with headroom; clamp to v7x's 64 MiB.
    csz = jnp.dtype(cdt).itemsize
    resident = ((w1_p.size + w2_p.size + w3_p.size) * csz
                + (b1_p.size + b2_p.size) * 4)
    io_bufs = (2 * TM * d * jnp.dtype(x.dtype).itemsize
               + 2 * TM * d_p * jnp.dtype(out_dtype).itemsize)
    interm = TM * (k_p + 2 * d_p) * 4 + TM * (d + k_p) * csz
    vmem_limit = int(1.4 * (resident + io_bufs + interm))
    vmem_limit = max(vmem_limit, 16 * 1024 * 1024)
    vmem_limit = min(vmem_limit, 64 * 1024 * 1024)

    flops = 2 * B * (d * k_p + k_p * d_p + d * d_p)
    bytes_accessed = (x.size * jnp.dtype(x.dtype).itemsize + resident
                      + B * d_p * jnp.dtype(out_dtype).itemsize)

    def resident_spec(shape):
        # Constant block across the grid -> single-buffered, stays VMEM-resident.
        return pl.BlockSpec(shape, lambda i: (0, 0),
                            pipeline_mode=pl.Buffered(1))

    # TODO(synk): for large d/k on v7x (64 MiB VMEM/TC, weights replicated per
    # core) add an output-column (N) grid axis tiling w2/w3/b2/out, and a K-axis
    # ("arbitrary") with an f32 accumulator scratch if w1 alone is too big to
    # stay fully resident.
    out_p = pl.pallas_call(
        twolayer_kernel,
        out_shape=jax.ShapeDtypeStruct((B, d_p), out_dtype),
        grid=grid,
        in_specs=[
            pl.BlockSpec((TM, d), lambda i: (i, 0)),   # x: batch-tiled, pipelined
            resident_spec((d, k_p)),                   # w1
            resident_spec((1, k_p)),                   # b1
            resident_spec((k_p, d_p)),                 # w2
            resident_spec((d, d_p)),                   # w3
            resident_spec((1, d_p)),                   # b2
        ],
        out_specs=pl.BlockSpec((TM, d_p), lambda i: (i, 0)),
        compiler_params=pltpu.CompilerParams(
            dimension_semantics=("parallel",),
            vmem_limit_bytes=vmem_limit,
        ),
        cost_estimate=pl.CostEstimate(
            flops=flops, transcendentals=0, bytes_accessed=int(bytes_accessed)
        ),
    )(x, w1_p, b1_p, w2_p, w3_p, b2_p)

    return out_p[:, :d] if d_p != d else out_p


def init_params(key, d, k, dtype=jnp.float32):
    """Deterministic init mimicking nn.Linear's uniform(-1/sqrt(fan_in), ...)."""
    k1, k2, k3, k4, k5 = jax.random.split(key, 5)
    bound1 = 1.0 / math.sqrt(d)
    bound2 = 1.0 / math.sqrt(k)
    # stored as (in, out) == transpose of PyTorch's (out, in) weight layout
    w1 = jax.random.uniform(k1, (d, k), dtype, -bound1, bound1)
    b1 = jax.random.uniform(k2, (1, k), dtype, -bound1, bound1)
    w2 = jax.random.uniform(k3, (k, d), dtype, -bound2, bound2)
    b2 = jax.random.uniform(k4, (1, d), dtype, -bound2, bound2)
    w3 = jax.random.uniform(k5, (d, d), dtype, -bound1, bound1)  # no bias
    return w1, b1, w2, b2, w3


if __name__ == "__main__":
    B, d, k = 8, 32, 64  # small shapes consistent with TwoLayer(d, k)
    key = jax.random.PRNGKey(0)
    kx, kp = jax.random.split(key)
    x = jax.random.normal(kx, (B, d), jnp.float32)
    w1, b1, w2, b2, w3 = init_params(kp, d, k)

    # Plain-JAX reference of the same math.
    ref = jnp.maximum(x @ w1 + b1, 0.0) @ w2 + b2 + x @ w3

    # f32 path: exact (modulo accumulation order).
    params_f32 = prepare_params(w1, b1, w2, b2, w3)
    out = jax.block_until_ready(two_layer_forward(x, params_f32))
    assert out.shape == (B, d)
    assert jnp.allclose(out, ref, atol=1e-5, rtol=1e-5)

    # bf16-MXU / f32-accumulate path (recommended on v5e/v6e/v7x): relaxed tol.
    params_bf16 = prepare_params(w1, b1, w2, b2, w3, compute_dtype=jnp.bfloat16)
    out_bf16 = jax.block_until_ready(two_layer_forward(x, params_bf16))
    assert out_bf16.shape == (B, d)
    assert jnp.allclose(out_bf16, ref, atol=5e-2, rtol=5e-2)

    print("KERNEL_OK")
</pallas_src>

<mosaic_0001>
module attributes {stable_mosaic.version = 11 : i64} {
  func.func @twolayer_kernel(%arg0: i32, %arg1: memref<8x32xf32, #tpu.memory_space<vmem>>, %arg2: memref<32x128xf32, #tpu.memory_space<vmem>>, %arg3: memref<1x128xf32, #tpu.memory_space<vmem>>, %arg4: memref<128x128xf32, #tpu.memory_space<vmem>>, %arg5: memref<32x128xf32, #tpu.memory_space<vmem>>, %arg6: memref<1x128xf32, #tpu.memory_space<vmem>>, %arg7: memref<8x128xf32, #tpu.memory_space<vmem>>) attributes {dimension_semantics = [#tpu.dimension_semantics<parallel>], iteration_bounds = array<i64: 1>, scalar_prefetch = 0 : i64, scratch_operands = 0 : i64, tpu.core_type = #tpu.core_type<tc>, window_params = [{transform_indices = @transform_0, window_bounds = array<i64: 8, 32>}, {pipeline_mode = #tpu.pipeline_mode<synchronous>, transform_indices = @transform_1, window_bounds = array<i64: 32, 128>}, {pipeline_mode = #tpu.pipeline_mode<synchronous>, transform_indices = @transform_2, window_bounds = array<i64: 1, 128>}, {pipeline_mode = #tpu.pipeline_mode<synchronous>, transform_indices = @transform_3, window_bounds = array<i64: 128, 128>}, {pipeline_mode = #tpu.pipeline_mode<synchronous>, transform_indices = @transform_4, window_bounds = array<i64: 32, 128>}, {pipeline_mode = #tpu.pipeline_mode<synchronous>, transform_indices = @transform_5, window_bounds = array<i64: 1, 128>}, {transform_indices = @transform_6, window_bounds = array<i64: 8, 128>}]} {
    %c0 = arith.constant 0 : index
    %c0_0 = arith.constant 0 : index
    %0 = vector.load %arg1[%c0, %c0_0] : memref<8x32xf32, #tpu.memory_space<vmem>>, vector<8x32xf32>
    %c0_1 = arith.constant 0 : index
    %c0_2 = arith.constant 0 : index
    %1 = vector.load %arg2[%c0_1, %c0_2] : memref<32x128xf32, #tpu.memory_space<vmem>>, vector<32x128xf32>
    %cst = arith.constant dense<0.000000e+00> : vector<8x128xf32>
    %2 = tpu.matmul %0, %1, %cst {dimension_numbers = #tpu.dot_dimension_numbers<[1], [0], [0], [1], [0, 0, 1, 1], [], []>} : vector<8x32xf32>, vector<32x128xf32>, vector<8x128xf32> -> vector<8x128xf32>
    %c0_3 = arith.constant 0 : index
    %c0_4 = arith.constant 0 : index
    %3 = vector.load %arg3[%c0_3, %c0_4] : memref<1x128xf32, #tpu.memory_space<vmem>>, vector<1x128xf32>
    %4 = vector.broadcast %3 : vector<1x128xf32> to vector<8x128xf32>
    %5 = arith.addf %2, %4 : vector<8x128xf32>
    %cst_5 = arith.constant 0.000000e+00 : f32
    %6 = vector.broadcast %cst_5 : f32 to vector<8x128xf32>
    %7 = arith.maximumf %5, %6 : vector<8x128xf32>
    %c0_6 = arith.constant 0 : index
    %c0_7 = arith.constant 0 : index
    %8 = vector.load %arg4[%c0_6, %c0_7] : memref<128x128xf32, #tpu.memory_space<vmem>>, vector<128x128xf32>
    %cst_8 = arith.constant dense<0.000000e+00> : vector<8x128xf32>
    %9 = tpu.matmul %7, %8, %cst_8 {dimension_numbers = #tpu.dot_dimension_numbers<[1], [0], [0], [1], [0, 0, 1, 1], [], []>} : vector<8x128xf32>, vector<128x128xf32>, vector<8x128xf32> -> vector<8x128xf32>
    %c0_9 = arith.constant 0 : index
    %c0_10 = arith.constant 0 : index
    %10 = vector.load %arg5[%c0_9, %c0_10] : memref<32x128xf32, #tpu.memory_space<vmem>>, vector<32x128xf32>
    %cst_11 = arith.constant dense<0.000000e+00> : vector<8x128xf32>
    %11 = tpu.matmul %0, %10, %cst_11 {dimension_numbers = #tpu.dot_dimension_numbers<[1], [0], [0], [1], [0, 0, 1, 1], [], []>} : vector<8x32xf32>, vector<32x128xf32>, vector<8x128xf32> -> vector<8x128xf32>
    %12 = arith.addf %9, %11 : vector<8x128xf32>
    %c0_12 = arith.constant 0 : index
    %c0_13 = arith.constant 0 : index
    %13 = vector.load %arg6[%c0_12, %c0_13] : memref<1x128xf32, #tpu.memory_space<vmem>>, vector<1x128xf32>
    %14 = vector.broadcast %13 : vector<1x128xf32> to vector<8x128xf32>
    %15 = arith.addf %12, %14 : vector<8x128xf32>
    %c0_14 = arith.constant 0 : index
    %c0_15 = arith.constant 0 : index
    %16 = vector.load %arg7[%c0_14, %c0_15] : memref<8x128xf32, #tpu.memory_space<vmem>>, vector<8x128xf32>
    tpu.vector_store %arg7[%c0_14, %c0_15], %15 {strides = array<i32>} : memref<8x128xf32, #tpu.memory_space<vmem>>, vector<8x128xf32>,
    return
  }
  func.func @transform_0(%arg0: i32) -> (i32, i32) {
    %c0_i32 = arith.constant 0 : i32
    %c0_i32_0 = arith.constant 0 : i32
    return %arg0, %c0_i32 : i32, i32
  }
  func.func @transform_1(%arg0: i32) -> (i32, i32) {
    %c0_i32 = arith.constant 0 : i32
    %c0_i32_0 = arith.constant 0 : i32
    %c0_i32_1 = arith.constant 0 : i32
    return %c0_i32, %c0_i32_0 : i32, i32
  }
  func.func @transform_2(%arg0: i32) -> (i32, i32) {
    %c0_i32 = arith.constant 0 : i32
    %c0_i32_0 = arith.constant 0 : i32
    %c0_i32_1 = arith.constant 0 : i32
    return %c0_i32, %c0_i32_0 : i32, i32
  }
  func.func @transform_3(%arg0: i32) -> (i32, i32) {
    %c0_i32 = arith.constant 0 : i32
    %c0_i32_0 = arith.constant 0 : i32
    %c0_i32_1 = arith.constant 0 : i32
    return %c0_i32, %c0_i32_0 : i32, i32
  }
  func.func @transform_4(%arg0: i32) -> (i32, i32) {
    %c0_i32 = arith.constant 0 : i32
    %c0_i32_0 = arith.constant 0 : i32
    %c0_i32_1 = arith.constant 0 : i32
    return %c0_i32, %c0_i32_0 : i32, i32
  }
  func.func @transform_5(%arg0: i32) -> (i32, i32) {
    %c0_i32 = arith.constant 0 : i32
    %c0_i32_0 = arith.constant 0 : i32
    %c0_i32_1 = arith.constant 0 : i32
    return %c0_i32, %c0_i32_0 : i32, i32
  }
  func.func @transform_6(%arg0: i32) -> (i32, i32) {
    %c0_i32 = arith.constant 0 : i32
    %c0_i32_0 = arith.constant 0 : i32
    return %arg0, %c0_i32 : i32, i32
  }
}

</mosaic_0001>

<bundles_post_ra>
// kernel: tpu_custom_call.1
= control target key start
LH: loop header
LB: loop body
LE: loop exit
PB: predicated region body
PF: predicated region fallthrough
CT: control target
= control target key end

     0   :  { %11 = vsyncpa [#allocation3], 0  ;;  %s727_s0 = inlined_call_operand.hbm [shape: f32[8,32], index: 0, kind: input, shape index: {}]   ;;  %s728_s1 = inlined_call_operand.hbm [shape: f32[32,128], index: 1, kind: input, shape index: {}]   ;;  %s729_s2 = inlined_call_operand.vmem [shape: f32[1,128], index: 2, kind: input, shape index: {}]   ;;  %s730_s3 = inlined_call_operand.hbm [shape: f32[128,128], index: 3, kind: input, shape index: {}]   ;;  %s731_s4 = inlined_call_operand.hbm [shape: f32[32,128], index: 4, kind: input, shape index: {}]   ;;  %s732_s5 = inlined_call_operand.vmem [shape: f32[1,128], index: 5, kind: input, shape index: {}]   ;;  %s733_s6 = inlined_call_operand.hbm [shape: f32[8,128], index: 6, kind: output, shape index: {}]  }
   0x1   :  { %12 = vsyncpa [#allocation6], 0 }
   0x2   :  { %13 = vsyncpa [#allocation9], 0 }
   0x3   :  { %14 = vsyncpa [#allocation4], 0  ;;  %s602_s21 = smov [#allocation5]   ;;  %s484_s25 = scalar_lea.hbm %s728_s1, 512 }
   0x4   :  { %s30_s22 = sshll.u32 %s602_s21, 4  ;;  %p485_p0 = scmp.ne.s32.totalorder %s728_s1, %s484_s25  ;;  %s31_s22 = int_to_ptr.vmem [resolvable:$true] %s30_s22 }
   0x5   :  { %p488_p1 = scmp.lt.u32.totalorder %s484_s25, %s728_s1 }
   0x7   :  { %p490_p2 = pnand %p488_p1, %p485_p0 }
   0x9   :  { %493 = shalt.err (!%p490_p2)
}
   0xa   :  { %s494_s30 = scalar_lea.vmem %s31_s22, 512  ;;  %p499_p4 = scmp.lt.s32.totalorder %s31_s22, %s31_s22 }
   0xb   :  { %p495_p3 = scmp.ne.s32.totalorder %s31_s22, %s494_s30  ;;  %p500_p5 = scmp.lt.s32.totalorder %s494_s30, %s494_s30 }
   0xd   :  { %p501_p6 = por %p500_p5, %p499_p4 }
   0xf   :  { %p502_p7 = pnand %p501_p6, %p495_p3 }
  0x11   :  { %505 = shalt.err (!%p502_p7)
}
  0x12   :  { %s603_s7 = smov 128   ;;  %s604_s8 = smov 8  }
  0x13   :  { %36 = dma.hbm_to_vmem [thread:$0]  %s728_s1, 512, %s31_s22, [#allocation6], %s603_s7, %s603_s7, %s604_s8  }
  0x14   :  { %s605_s11 = smov [#allocation2]   ;;  %s606_s13 = smov [#allocation7]  }
  0x15   :  { %s21_s12 = sshll.u32 %s605_s11, 4  ;;  %s44_s14 = sshll.u32 %s606_s13, 4  ;;  %s22_s12 = int_to_ptr.vmem [resolvable:$true] %s21_s12  ;;  %s45_s14 = int_to_ptr.vmem [resolvable:$true] %s44_s14 }
  0x16   :  { %s506_s17 = scalar_lea.hbm %s727_s0, 128 }
  0x17   :  { %p507_p8 = scmp.ne.s32.totalorder %s727_s0, %s506_s17  ;;  %p510_p9 = scmp.lt.u32.totalorder %s506_s17, %s727_s0 }
  0x19   :  { %p512_p10 = pnand %p510_p9, %p507_p8 }
  0x1b   :  { %515 = shalt.err (!%p512_p10)
}
  0x1c   :  { %s516_s1 = scalar_lea.vmem %s22_s12, 128  ;;  %p521_p12 = scmp.lt.s32.totalorder %s22_s12, %s22_s12 }
  0x1d   :  { %p517_p11 = scmp.ne.s32.totalorder %s22_s12, %s516_s1  ;;  %p522_p13 = scmp.lt.s32.totalorder %s516_s1, %s516_s1 }
  0x1f   :  { %p523_p0 = por %p522_p13, %p521_p12 }
  0x21   :  { %p524_p1 = pnand %p523_p0, %p517_p11 }
  0x23   :  { %527 = shalt.err (!%p524_p1)
}
  0x24   :  { %24 = dma.hbm_to_vmem [thread:$0]  %s727_s0, 128, %s22_s12, [#allocation3]  }
  0x25   :  { %s528_s26 = scalar_lea.hbm %s730_s3, 2048 }
  0x26   :  { %p529_p2 = scmp.ne.s32.totalorder %s730_s3, %s528_s26  ;;  %p532_p3 = scmp.lt.u32.totalorder %s528_s26, %s730_s3 }
  0x28   :  { %p534_p4 = pnand %p532_p3, %p529_p2 }
  0x2a   :  { %537 = shalt.err (!%p534_p4)
}
  0x2b   :  { %s538_s9 = scalar_lea.vmem %s45_s14, 2048  ;;  %p543_p6 = scmp.lt.s32.totalorder %s45_s14, %s45_s14 }
  0x2c   :  { %p539_p5 = scmp.ne.s32.totalorder %s45_s14, %s538_s9  ;;  %p544_p7 = scmp.lt.s32.totalorder %s538_s9, %s538_s9 }
  0x2e   :  { %p545_p8 = por %p544_p7, %p543_p6 }
  0x30   :  { %p546_p9 = pnand %p545_p8, %p539_p5 }
  0x32   :  { %549 = shalt.err (!%p546_p9)
}
  0x33   :  { %50 = dma.hbm_to_vmem [thread:$0]  %s730_s3, 2048, %s45_s14, [#allocation6], %s603_s7, %s603_s7, %s604_s8  }
  0x34   :  { %s607_s11 = smov [#allocation8]   ;;  %s550_s16 = scalar_lea.hbm %s731_s4, 512 }
  0x35   :  { %s56_s12 = sshll.u32 %s607_s11, 4  ;;  %p551_p10 = scmp.ne.s32.totalorder %s731_s4, %s550_s16  ;;  %s57_s12 = int_to_ptr.vmem [resolvable:$true] %s56_s12 }
  0x36   :  { %p554_p11 = scmp.lt.u32.totalorder %s550_s16, %s731_s4 }
  0x38   :  { %p556_p12 = pnand %p554_p11, %p551_p10 }
  0x3a   :  { %559 = shalt.err (!%p556_p12)
}
  0x3b   :  { %s560_s21 = scalar_lea.vmem %s57_s12, 512  ;;  %p565_p0 = scmp.lt.s32.totalorder %s57_s12, %s57_s12 }
  0x3c   :  { %p561_p13 = scmp.ne.s32.totalorder %s57_s12, %s560_s21  ;;  %p566_p1 = scmp.lt.s32.totalorder %s560_s21, %s560_s21 }
  0x3e   :  { %p567_p2 = por %p566_p1, %p565_p0 }
  0x40   :  { %p568_p3 = pnand %p567_p2, %p561_p13 }
  0x42   :  { %571 = shalt.err (!%p568_p3)
}
  0x43   :  { %62 = dma.hbm_to_vmem [thread:$0]  %s731_s4, 512, %s57_s12, [#allocation9], %s603_s7, %s603_s7, %s604_s8  }
  0x44   :  { %594 = dma.done.wait [#allocation3], 128  }
  0x45   :  { %595 = vsyncadd [#allocation3], 4294967168 }
  0x46   :  { %596 = dma.done.wait [#allocation6], 2560  }
  0x47   :  { %597 = vsyncadd [#allocation6], 4294964736 }
  0x48   :  { %598 = dma.done.wait [#allocation9], 512  }
  0x49   :  { %599 = vsyncadd [#allocation9], 4294966784  ;;  %v608_v0 = vmov 0.0|0.0   ;;  %vm609_vm0 = vmmov 0   ;;  %v610_v1 = vmov 0.0   ;;  %v78_v2 = vld [vmem:[#allocation5] sm:$0xff] }
  0x4a   :  { %438 = vmatprep.subr.bf16.mxu1 %v608_v0  ;;  %389 = vmatprep.mubr.msk.f32.mxu1 %vm609_vm0, %v610_v1  ;;  %v79_v3 = vld [vmem:[#allocation5 + $0x8] sm:$0xff]  ;;  %v80_v4 = vld [vmem:[#allocation5 + $0x10] sm:$0xff]  ;;  %v81_v6 = vld [vmem:[#allocation5 + $0x18] sm:$0xff]  ;;  %vm89_vm1 = vcmask 261120   ;;  %s611_s22 = smov [#allocation10]  }
  0x4b   :  { %450 = vmatprep.subr.bf16.mxu0 %v608_v0  ;;  %435 = vmatprep.mubr.msk.f32.mxu0 %vm609_vm0, %v610_v1  ;;  %v439_v5 = vpack.c.bf16 %v79_v3, %v78_v2  ;;  %v164_v7 = vld [vmem:[#allocation7] sm:$0xff]  ;;  %v165_v8 = vld [vmem:[#allocation7 + $0x8] sm:$0xff]  ;;  %v166_v9 = vld [vmem:[#allocation7 + $0x10] sm:$0xff]  ;;  %v442_v11 = vpack.c.bf16 %v81_v6, %v80_v4  ;;  %s339_s23 = sshll.u32 %s611_s22, 4  ;;  %s340_s23 = int_to_ptr.vmem [resolvable:$true] %s339_s23 }
  0x4c   :  { %v167_v10 = vld [vmem:[#allocation7 + $0x18] sm:$0xff]  ;;  %v451_v12 = vpack.c.bf16 %v165_v8, %v164_v7  ;;  %v180_v14 = vld [vmem:[#allocation8] sm:$0xff]  ;;  %v169_v16 = vld [vmem:[#allocation7 + $0x28] sm:$0xff]  ;;  %p577_p5 = scmp.lt.s32.totalorder %s340_s23, %s340_s23 }
  0x4d   :  { %440 = vmatpush3.bf16.msra.mxu1 %v439_v5  ;;  %v454_v13 = vpack.c.bf16 %v167_v10, %v166_v9  ;;  %v168_v15 = vld [vmem:[#allocation7 + $0x20] sm:$0xff]  ;;  %v181_v17 = vld [vmem:[#allocation8 + $0x8] sm:$0xff]  ;;  %v77_v18 = vld [vmem:[#allocation2] sm:$0xff] }
  0x4e   :  { %441 = vmatprep.subr.bf16.mxu1 %v608_v0  ;;  %452 = vmatpush3.bf16.msra.mxu0 %v451_v12  ;;  %v445_v19 = vpack.c.bf16 %v181_v17, %v180_v14  ;;  %v457_v20 = vpack.c.bf16 %v169_v16, %v168_v15  ;;  %v170_v21 = vld [vmem:[#allocation7 + $0x30] sm:$0xff]  ;;  %v171_v22 = vld [vmem:[#allocation7 + $0x38] sm:$0xff]  ;;  %v172_v24 = vld [vmem:[#allocation7 + $0x40] sm:$0xff] }
  0x4f   :  { %453 = vmatprep.subr.bf16.mxu0 %v608_v0  ;;  %v460_v23 = vpack.c.bf16 %v171_v22, %v170_v21  ;;  %v173_v25 = vld [vmem:[#allocation7 + $0x48] sm:$0xff]  ;;  %v174_v27 = vld [vmem:[#allocation7 + $0x50] sm:$0xff]  ;;  %v175_v28 = vld [vmem:[#allocation7 + $0x58] sm:$0xff] }
  0x50   :  { %v463_v26 = vpack.c.bf16 %v173_v25, %v172_v24  ;;  %v466_v29 = vpack.c.bf16 %v175_v28, %v174_v27  ;;  %v176_v30 = vld [vmem:[#allocation7 + $0x60] sm:$0xff]  ;;  %v177_v31 = vld [vmem:[#allocation7 + $0x68] sm:$0xff]  ;;  %v182_v33 = vld [vmem:[#allocation8 + $0x10] sm:$0xff] }
  0x51   :  { %443 = vmatpush3.bf16.msra.mxu1 %v442_v11  ;;  %v469_v32 = vpack.c.bf16 %v177_v31, %v176_v30  ;;  %v183_v34 = vld [vmem:[#allocation8 + $0x18] sm:$0xff]  ;;  %v178_v36 = vld [vmem:[#allocation7 + $0x70] sm:$0xff] }
  0x52   :  { %444 = vmatprep.subr.bf16.mxu1 %v608_v0  ;;  %455 = vmatpush3.bf16.msra.mxu0 %v454_v13  ;;  %v448_v35 = vpack.c.bf16 %v183_v34, %v182_v33  ;;  %v179_v37 = vld [vmem:[#allocation7 + $0x78] sm:$0xff] }
  0x53   :  { %456 = vmatprep.subr.bf16.mxu0 %v608_v0  ;;  %v472_v38 = vpack.c.bf16 %v179_v37, %v178_v36  ;;  %v350_v39 = vld [vmem:[%s729_s2] ss:$0 sm:$0xff]  ;;  %s572_s2 = scalar_lea.vmem %s340_s23, 128 }
  0x54   :  { %390 = vmatmul.mubr.msk.f32.vlgmr.msra.gmra.mrb[0].mxu1 %vm89_vm1, %v77_v18  ;;  %v353_v47 = vld [vmem:[%s732_s5] ss:$0 sm:$0xff]  ;;  %p573_p4 = scmp.ne.s32.totalorder %s340_s23, %s572_s2  ;;  %p578_p6 = scmp.lt.s32.totalorder %s572_s2, %s572_s2 }
  0x55   :  { %446 = vmatpush3.bf16.msra.mxu1 %v445_v19  ;;  %400 = vmatprep.mubr.msk.f32.mxu1 %vm609_vm0, %v610_v1 }
  0x56   :  { %447 = vmatprep.subr.bf16.mxu1 %v608_v0  ;;  %458 = vmatpush3.bf16.msra.mxu0 %v457_v20  ;;  %p579_p7 = por %p578_p6, %p577_p5 }
  0x57   :  { %459 = vmatprep.subr.bf16.mxu0 %v608_v0 }
  0x58   :  { %p580_p8 = pnand %p579_p7, %p573_p4 }
  0x59   :  { %449 = vmatpush3.bf16.msra.mxu1 %v448_v35 }
  0x5a   :  { %461 = vmatpush3.bf16.msra.mxu0 %v460_v23 }
  0x5b   :  { %462 = vmatprep.subr.bf16.mxu0 %v608_v0 }
  0x5c   :  { %401 = vmatmul.mubr.msk.f32.vlgmr.msra.gmra.mrb[2].mxu1 %vm89_vm1, %v77_v18 }
  0x5e   :  { %464 = vmatpush3.bf16.msra.mxu0 %v463_v26 }
  0x5f   :  { %465 = vmatprep.subr.bf16.mxu0 %v608_v0 }
  0x62   :  { %467 = vmatpush3.bf16.msra.mxu0 %v466_v29 }
  0x63   :  { %468 = vmatprep.subr.bf16.mxu0 %v608_v0 }
  0x66   :  { %470 = vmatpush3.bf16.msra.mxu0 %v469_v32 }
  0x67   :  { %471 = vmatprep.subr.bf16.mxu0 %v608_v0 }
  0x6a   :  { %473 = vmatpush3.bf16.msra.mxu0 %v472_v38 }
 0x127   :  { %v159_v40 = vpop.f32.mrb[0].mxu1 }
 0x128   :  { %v160_v41 = vadd.f32 %v350_v39, %v159_v40  ;;  %v391_v42 = vpop.f32.mrb[1].mxu1 }
 0x12a   :  { %v163_v43 = vmax.f32 %v160_v41, 0.0 }
 0x12c   :  { %436 = vmatmul.mubr.f32.vlgmr.msra.gmra.mrb[0].mxu0 %v163_v43 }
 0x12f   :  { %v250_v44 = vpop.f32.mrb[2].mxu1 }
 0x130   :  { %v402_v45 = vpop.f32.mrb[3].mxu1 }
 0x1ff   :  { %v320_v46 = vpop.f32.mrb[0].mxu0 }
 0x200   :  { %v321_v48 = vadd.f32 %v320_v46, %v250_v44  ;;  %v437_v49 = vpop.f32.mrb[1].mxu0 }
 0x202   :  { %v331_v50 = vadd.f32 %v353_v47, %v321_v48 }
 0x204   :  { %332 = vst [vmem:[#allocation10] sm:$0xff] %v331_v50 }
 0x205   :  { %583 = shalt.err (!%p580_p8)
}
 0x206   :  { %s584_s26 = scalar_lea.hbm %s733_s6, 128 }
 0x207   :  { %p585_p9 = scmp.ne.s32.totalorder %s733_s6, %s584_s26  ;;  %p588_p10 = scmp.lt.u32.totalorder %s584_s26, %s733_s6 }
 0x209   :  { %p590_p11 = pnand %p588_p10, %p585_p9 }
 0x20b   :  { %593 = shalt.err (!%p590_p11)
}
 0x20c   :  { %342 = dma.vmem_to_hbm [thread:$0]  %s340_s23, 128, %s733_s6, [#allocation4]  }
 0x20d   :  { %600 = dma.done.wait [#allocation4], 128  }
 0x20e   :  { %601 = vsyncadd [#allocation4], 4294967168 }
 0x20f   :  { %346 = vsyncpa [#allocation3], 1 }
 0x210   :  { %347 = vsyncpa [#allocation6], 1 }
 0x211   :  { %348 = vsyncpa [#allocation9], 1 }
 0x212   :  { %349 = vsyncpa [#allocation4], 1 }

</bundles_post_ra>
